<compile_context>
chip_gen: v5e
topology: v5e:2x2
jax: 0.10.0
libtpu: 0.0.40
codegen_flags: <defaults>
</compile_context>

<pallas_src>
import jax
import jax.numpy as jnp
from jax.experimental import pallas as pl
from jax.experimental.pallas import tpu as pltpu

EPS = 1e-6


def _residual_ln_kernel(alpha_ref, beta_ref, x_ref, o_ref):
    # x_ref: (TILE_ROWS, H) block in VMEM. Compute in f32, store in input dtype.
    xf = x_ref[...].astype(jnp.float32)
    h = xf.shape[-1]

    mean = jnp.mean(xf, axis=-1, keepdims=True)                      # (tile, 1)
    d = xf - mean                                                    # short-lived full-width temp
    # torch.std default = unbiased estimator (divide by N-1).
    var = jnp.sum(d * d, axis=-1, keepdims=True) * jnp.float32(1.0 / (h - 1))
    std = jnp.sqrt(var)

    # Per-row gain g = alpha / (std + eps); exact reciprocal to match PyTorch numerics.
    g = alpha_ref[0] * pl.reciprocal(std + jnp.float32(EPS), approx=False)   # (tile, 1)
    scale = g + jnp.float32(1.0)              # folds the "+ x" residual into the affine
    shift = beta_ref[0] - mean * g            # (tile, 1)

    # dropout (eval) = identity. Single full-width mul + add.
    o_ref[...] = (xf * scale + shift).astype(o_ref.dtype)


def _round_up(n: int, m: int) -> int:
    return (n + m - 1) // m * m


def _vmem_limit_bytes() -> int:
    """Generation-aware scoped-VMEM request: physical capacity minus headroom,
    capped at 96 MiB (v5e/v6e) and naturally ~56 MiB on v7x (64 MiB physical)."""
    try:
        cap = int(pltpu.get_tpu_info().vmem_capacity_bytes)
    except Exception:
        cap = 64 * 1024 * 1024  # conservative fallback = v7x per-TC VMEM
    limit = min(cap - 8 * 1024 * 1024, 96 * 1024 * 1024)
    return max(limit, 16 * 1024 * 1024)


def residual_connection(x, alpha, beta, *, tile_rows=512):
    """x: [B, S, H] float array. alpha, beta: shape (1,) float32 params.
    NOTE: the PyTorch module's `residual` argument is ignored (it adds x)."""
    B, S, H = x.shape
    rows = B * S
    itemsize = jnp.dtype(x.dtype).itemsize

    vmem_limit = _vmem_limit_bytes()
    # VMEM per tile row: 2 double-buffered input blocks + 2 output blocks (4 * itemsize)
    # plus ~2 live f32 full-width temporaries inside the kernel body (xf, d).
    per_row_bytes = H * (4 * itemsize + 2 * 4)
    budget = vmem_limit - 4 * 1024 * 1024          # headroom for Mosaic internal scratch
    cap = max(16, (budget // per_row_bytes) // 16 * 16)

    # Multiple of 16 rows (sublane packing incl. bf16); never bigger than the padded row
    # count. Ragged last block is clipped by Pallas (no jnp.pad / slice round trip).
    tile = min(tile_rows, cap, _round_up(rows, 16))
    tile = max(16, (tile // 16) * 16)

    grid = (pl.cdiv(rows, tile),)
    x2d = x.reshape(rows, H)

    out2d = pl.pallas_call(
        _residual_ln_kernel,
        out_shape=jax.ShapeDtypeStruct((rows, H), x.dtype),
        grid_spec=pltpu.PrefetchScalarGridSpec(
            num_scalar_prefetch=0,
            grid=grid,
            in_specs=[
                pl.BlockSpec(memory_space=pltpu.MemorySpace.SMEM),   # alpha (1,)
                pl.BlockSpec(memory_space=pltpu.MemorySpace.SMEM),   # beta  (1,)
                pl.BlockSpec((tile, H), lambda i: (i, 0)),           # x tile
            ],
            out_specs=pl.BlockSpec((tile, H), lambda i: (i, 0)),
        ),
        compiler_params=pltpu.CompilerParams(
            dimension_semantics=("parallel",),
            vmem_limit_bytes=int(vmem_limit),
        ),
    )(alpha.astype(jnp.float32), beta.astype(jnp.float32), x2d)

    return out2d.reshape(B, S, H)


def _reference(x, alpha, beta):
    xf = x.astype(jnp.float32)
    mean = jnp.mean(xf, axis=-1, keepdims=True)
    var = jnp.sum((xf - mean) ** 2, axis=-1, keepdims=True) / (x.shape[-1] - 1)
    std = jnp.sqrt(var)
    normed = alpha[0] * (xf - mean) / (std + EPS) + beta[0]
    return (normed + xf).astype(x.dtype)


if __name__ == "__main__":
    key = jax.random.PRNGKey(0)
    kx, kr, kx2, kx3 = jax.random.split(key, 4)

    # Deterministic parameter init per LayerNormalization.__init__
    alpha = jnp.ones((1,), dtype=jnp.float32)
    beta = jnp.zeros((1,), dtype=jnp.float32)

    # Case 1: small shape consistent with the module spec (rows divide the tile).
    B, S, H = 2, 8, 32
    x = jax.random.normal(kx, (B, S, H), dtype=jnp.float32)
    residual = jax.random.normal(kr, (B, S, H), dtype=jnp.float32)  # ignored, as in PyTorch

    out = jax.block_until_ready(residual_connection(x, alpha, beta))
    ref = _reference(x, alpha, beta)
    assert out.shape == (B, S, H)
    assert jnp.allclose(out, ref, atol=2e-5, rtol=2e-5), "mismatch vs reference (case 1)"

    # Case 2: ragged row count (exercises the clipped last-block path), lane-dense H.
    B2, S2, H2 = 3, 7, 256
    x2 = jax.random.normal(kx2, (B2, S2, H2), dtype=jnp.float32)
    out2 = jax.block_until_ready(residual_connection(x2, alpha, beta))
    ref2 = _reference(x2, alpha, beta)
    assert out2.shape == (B2, S2, H2)
    assert jnp.allclose(out2, ref2, atol=2e-5, rtol=2e-5), "mismatch vs reference (case 2)"

    # Case 3: bf16 input (exercises the f32 compute / narrow-store path), ragged rows.
    B3, S3, H3 = 2, 9, 128
    x3 = jax.random.normal(kx3, (B3, S3, H3), dtype=jnp.float32).astype(jnp.bfloat16)
    out3 = jax.block_until_ready(residual_connection(x3, alpha, beta))
    ref3 = _reference(x3, alpha, beta)
    assert out3.shape == (B3, S3, H3)
    assert jnp.allclose(out3.astype(jnp.float32), ref3.astype(jnp.float32),
                        atol=3e-2, rtol=3e-2), "mismatch vs reference (case 3)"

    print("KERNEL_OK")
</pallas_src>

<mosaic_0001>
module attributes {stable_mosaic.version = 11 : i64} {
  func.func @_residual_ln_kernel(%arg0: i32, %arg1: memref<1xf32, #tpu.memory_space<smem>>, %arg2: memref<1xf32, #tpu.memory_space<smem>>, %arg3: memref<16x32xf32, #tpu.memory_space<vmem>>, %arg4: memref<16x32xf32, #tpu.memory_space<vmem>>) attributes {dimension_semantics = [#tpu.dimension_semantics<parallel>], iteration_bounds = array<i64: 1>, scalar_prefetch = 0 : i64, scratch_operands = 0 : i64, tpu.core_type = #tpu.core_type<tc>, window_params = [{transform_indices = @transform_0, window_bounds = array<i64: 1>}, {transform_indices = @transform_1, window_bounds = array<i64: 1>}, {transform_indices = @transform_2, window_bounds = array<i64: 16, 32>}, {transform_indices = @transform_3, window_bounds = array<i64: 16, 32>}]} {
    %c0 = arith.constant 0 : index
    %c0_0 = arith.constant 0 : index
    %0 = vector.load %arg3[%c0, %c0_0] : memref<16x32xf32, #tpu.memory_space<vmem>>, vector<16x32xf32>
    %cst = arith.constant dense<0.000000e+00> : vector<16xf32>
    %1 = vector.multi_reduction <add>, %0, %cst [1] : vector<16x32xf32> to vector<16xf32>
    %2 = vector.shape_cast %1 : vector<16xf32> to vector<16x1xf32>
    %cst_1 = arith.constant 3.200000e+01 : f32
    %3 = vector.broadcast %cst_1 : f32 to vector<16x1xf32>
    %4 = arith.divf %2, %3 : vector<16x1xf32>
    %5 = vector.broadcast %4 : vector<16x1xf32> to vector<16x32xf32>
    %6 = arith.subf %0, %5 : vector<16x32xf32>
    %7 = arith.mulf %6, %6 : vector<16x32xf32>
    %cst_2 = arith.constant dense<0.000000e+00> : vector<16xf32>
    %8 = vector.multi_reduction <add>, %7, %cst_2 [1] : vector<16x32xf32> to vector<16xf32>
    %9 = vector.shape_cast %8 : vector<16xf32> to vector<16x1xf32>
    %cst_3 = arith.constant 0.0322580636 : f32
    %10 = vector.broadcast %cst_3 : f32 to vector<16x1xf32>
    %11 = arith.mulf %9, %10 : vector<16x1xf32>
    %12 = math.sqrt %11 : vector<16x1xf32>
    %c0_4 = arith.constant 0 : index
    %13 = memref.load %arg1[%c0_4] : memref<1xf32, #tpu.memory_space<smem>>
    %cst_5 = arith.constant 9.99999997E-7 : f32
    %14 = vector.broadcast %cst_5 : f32 to vector<16x1xf32>
    %15 = arith.addf %12, %14 : vector<16x1xf32>
    %16 = tpu.reciprocal %15 : vector<16x1xf32> -> vector<16x1xf32>
    %17 = vector.broadcast %13 : f32 to vector<16x1xf32>
    %18 = arith.mulf %17, %16 : vector<16x1xf32>
    %cst_6 = arith.constant 1.000000e+00 : f32
    %19 = vector.broadcast %cst_6 : f32 to vector<16x1xf32>
    %20 = arith.addf %18, %19 : vector<16x1xf32>
    %c0_7 = arith.constant 0 : index
    %21 = memref.load %arg2[%c0_7] : memref<1xf32, #tpu.memory_space<smem>>
    %22 = arith.mulf %4, %18 : vector<16x1xf32>
    %23 = vector.broadcast %21 : f32 to vector<16x1xf32>
    %24 = arith.subf %23, %22 : vector<16x1xf32>
    %25 = vector.broadcast %20 : vector<16x1xf32> to vector<16x32xf32>
    %26 = arith.mulf %0, %25 : vector<16x32xf32>
    %27 = vector.broadcast %24 : vector<16x1xf32> to vector<16x32xf32>
    %28 = arith.addf %26, %27 : vector<16x32xf32>
    %c0_8 = arith.constant 0 : index
    %c0_9 = arith.constant 0 : index
    %29 = vector.load %arg4[%c0_8, %c0_9] : memref<16x32xf32, #tpu.memory_space<vmem>>, vector<16x32xf32>
    tpu.vector_store %arg4[%c0_8, %c0_9], %28 {strides = array<i32>} : memref<16x32xf32, #tpu.memory_space<vmem>>, vector<16x32xf32>,
    return
  }
  func.func @transform_0(%arg0: i32) -> i32 {
    %c0_i32 = arith.constant 0 : i32
    %c0_i32_0 = arith.constant 0 : i32
    return %c0_i32 : i32
  }
  func.func @transform_1(%arg0: i32) -> i32 {
    %c0_i32 = arith.constant 0 : i32
    %c0_i32_0 = arith.constant 0 : i32
    return %c0_i32 : i32
  }
  func.func @transform_2(%arg0: i32) -> (i32, i32) {
    %c0_i32 = arith.constant 0 : i32
    %c0_i32_0 = arith.constant 0 : i32
    return %arg0, %c0_i32 : i32, i32
  }
  func.func @transform_3(%arg0: i32) -> (i32, i32) {
    %c0_i32 = arith.constant 0 : i32
    %c0_i32_0 = arith.constant 0 : i32
    return %arg0, %c0_i32 : i32, i32
  }
}

</mosaic_0001>

<bundles_post_ra>
// kernel: tpu_custom_call.1
= control target key start
LH: loop header
LB: loop body
LE: loop exit
PB: predicated region body
PF: predicated region fallthrough
CT: control target
= control target key end

     0   :  { %10 = vsyncpa [#allocation5], 0  ;;  %s288_s0 = inlined_call_operand.<no memory space> [shape: f32[1], index: 0, kind: input, shape index: {}]   ;;  %s289_s1 = inlined_call_operand.<no memory space> [shape: f32[1], index: 1, kind: input, shape index: {}]   ;;  %s290_s2 = inlined_call_operand.hbm [shape: f32[16,32], index: 2, kind: input, shape index: {}]   ;;  %s291_s3 = inlined_call_operand.hbm [shape: f32[16,32], index: 3, kind: output, shape index: {}]  }
   0x1   :  { %11 = vsyncpa [#allocation6], 0  ;;  %s20_s14 = sshll.u32 %s290_s2, 4  ;;  %s221_s15 = smov [#allocation4]   ;;  %s21_s14 = int_to_ptr.hbm [resolvable:$true] %s20_s14 }
   0x2   :  { %s22_s16 = sshll.u32 %s221_s15, 4  ;;  %s222_s17 = smov 128   ;;  %s23_s16 = int_to_ptr.vmem [resolvable:$true] %s22_s16 }
   0x3   :  { %s223_s18 = smov 8  }
   0x4   :  { %28 = dma.hbm_to_vmem [thread:$0]  %s21_s14, 256, %s23_s16, [#allocation5], %s222_s17, %s222_s17, %s223_s18  }
   0x5   :  { %217 = dma.done.wait [#allocation5], 256  }
   0x6   :  { %218 = vsyncadd [#allocation5], 4294967040  ;;  %vm35_vm0 = vcmask 261120   ;;  %v252_v0 = vld [vmem:[#allocation4] sm:$0xff]  ;;  %v256_v2 = vld [vmem:[#allocation4 + $0x8] sm:$0xff]  ;;  %v224_v4 = vmov 32.0   ;;  %v118_v56 = vstv %s288_s0 }
   0x7   :  { %v36_v1 = vsel %vm35_vm0, %v252_v0, 0.0  ;;  %v39_v3 = vsel %vm35_vm0, %v256_v2, 0.0  ;;  %159 = vrcp.f32 %v224_v4  ;;  %s225_s0 = smov [#allocation7]   ;;  %s141_s24 = sshll.u32 %s291_s3, 4  ;;  %s142_s24 = int_to_ptr.hbm [resolvable:$true] %s141_s24 }
   0x8   :  { %37 = vadd.xlane.f32.xlu0 %v36_v1  ;;  %v126_v1 = vstv %s289_s1  ;;  %s139_s1 = sshll.u32 %s225_s0, 4  ;;  %s140_s1 = int_to_ptr.vmem [resolvable:$true] %s139_s1 }
   0xd   :  { %v160_v5 = vpop.eup %159 }
   0xe   :  { %v43_v6 = vmul.f32 32.0, %v160_v5  ;;  %vm47_vm1 = vweird.f32 %v160_v5 }
  0x10   :  { %40 = vadd.xlane.f32.xlu0 %v39_v3  ;;  %v44_v7 = vsub.f32 1.0, %v43_v6 }
  0x12   :  { %v45_v8 = vmul.f32 %v160_v5, %v44_v7 }
  0x14   :  { %v46_v9 = vadd.f32 %v160_v5, %v45_v8 }
  0x16   :  { %v48_v10 = vsel %vm47_vm1, %v160_v5, %v46_v9 }
  0x7b   :  { %v38_v11 = vpop.xlane.xlu0 %37 }
  0x7c   :  { %v260_v12 = vmul.f32 %v48_v10, %v38_v11 }
  0x7e   :  { %v51_v13 = vsub.f32 %v252_v0, %v260_v12 }
  0x80   :  { %v53_v14 = vmul.f32 %v51_v13, %v51_v13 }
  0x82   :  { %v55_v15 = vsel %vm35_vm0, %v53_v14, 0.0 }
  0x83   :  { %56 = vadd.xlane.f32.xlu1 %v55_v15  ;;  %v41_v16 = vpop.xlane.xlu0 %40 }
  0x84   :  { %v265_v17 = vmul.f32 %v48_v10, %v41_v16 }
  0x86   :  { %v52_v18 = vsub.f32 %v256_v2, %v265_v17 }
  0x88   :  { %v54_v19 = vmul.f32 %v52_v18, %v52_v18 }
  0x8a   :  { %v58_v20 = vsel %vm35_vm0, %v54_v19, 0.0 }
  0x8b   :  { %59 = vadd.xlane.f32.xlu1 %v58_v20 }
  0xf6   :  { %v57_v21 = vpop.xlane.xlu1 %56 }
  0xf7   :  { %v61_v22 = vmul.f32 0.032258064, %v57_v21 }
  0xf9   :  { %161 = vrsqrt.f32 %v61_v22  ;;  %vm70_vm2 = vcmp.eq.f32.partialorder %v61_v22, inf  ;;  %v73_v35 = vand.u32 2147483648, %v61_v22  ;;  %vm72_vm3 = vcmp.eq.f32.partialorder %v61_v22, 0.0 }
  0xfe   :  { %v60_v23 = vpop.xlane.xlu1 %59 }
  0xff   :  { %v162_v24 = vpop.eup %161  ;;  %v62_v25 = vmul.f32 0.032258064, %v60_v23 }
 0x100   :  { %v64_v26 = vmul.f32 %v162_v24, %v61_v22 }
 0x101   :  { %163 = vrsqrt.f32 %v62_v25  ;;  %vm82_vm4 = vcmp.eq.f32.partialorder %v62_v25, inf  ;;  %v85_v43 = vand.u32 2147483648, %v62_v25  ;;  %vm84_vm5 = vcmp.eq.f32.partialorder %v62_v25, 0.0 }
 0x102   :  { %v65_v27 = vmul.f32 %v162_v24, %v64_v26 }
 0x104   :  { %v66_v28 = vmul.f32 0.5, %v65_v27 }
 0x106   :  { %v67_v29 = vsub.f32 1.5, %v66_v28 }
 0x107   :  { %v164_v30 = vpop.eup %163 }
 0x108   :  { %v68_v31 = vmul.f32 %v162_v24, %v67_v29  ;;  %v76_v32 = vmul.f32 %v164_v30, %v62_v25 }
 0x10a   :  { %v69_v33 = vmul.f32 %v68_v31, %v61_v22  ;;  %v77_v34 = vmul.f32 %v164_v30, %v76_v32 }
 0x10c   :  { %v71_v36 = vsel %vm70_vm2, %v61_v22, %v69_v33  ;;  %v78_v37 = vmul.f32 0.5, %v77_v34 }
 0x10d   :  { %v74_v38 = vsel %vm72_vm3, %v73_v35, %v71_v36 }
 0x10e   :  { %v88_v39 = vadd.f32 1e-06, %v74_v38  ;;  %v79_v40 = vsub.f32 1.5, %v78_v37 }
 0x110   :  { %165 = vrcp.f32 %v88_v39  ;;  %v80_v41 = vmul.f32 %v164_v30, %v79_v40  ;;  %v101_v50 = vand.u32 2147483648, %v88_v39  ;;  %v99_v52 = vand.u32 2147483647, %v88_v39 }
 0x111   :  { %vm95_vm7 = vweird.f32 %v88_v39 }
 0x112   :  { %v81_v42 = vmul.f32 %v80_v41, %v62_v25  ;;  %v102_v55 = vor.u32 1.1754944e-38, %v101_v50  ;;  %vm100_vm9 = vcmp.eq.f32.partialorder %v99_v52, 8.507059e+37 }
 0x114   :  { %v83_v44 = vsel %vm82_vm4, %v62_v25, %v81_v42 }
 0x115   :  { %v86_v45 = vsel %vm84_vm5, %v85_v43, %v83_v44 }
 0x116   :  { %v166_v46 = vpop.eup %165  ;;  %v89_v47 = vadd.f32 1e-06, %v86_v45 }
 0x117   :  { %v91_v48 = vmul.f32 %v166_v46, %v88_v39  ;;  %vm96_vm6 = vweird.f32 %v166_v46 }
 0x118   :  { %167 = vrcp.f32 %v89_v47  ;;  %vm97_vm8 = vmor %vm95_vm7, %vm96_vm6  ;;  %v113_v62 = vand.u32 2147483647, %v89_v47  ;;  %v115_v63 = vand.u32 2147483648, %v89_v47  ;;  %vm109_vm11 = vweird.f32 %v89_v47 }
 0x119   :  { %v92_v49 = vsub.f32 1.0, %v91_v48 }
 0x11a   :  { %v116_v9 = vor.u32 1.1754944e-38, %v115_v63  ;;  %vm114_vm13 = vcmp.eq.f32.partialorder %v113_v62, 8.507059e+37 }
 0x11b   :  { %v93_v51 = vmul.f32 %v166_v46, %v92_v49 }
 0x11d   :  { %v94_v53 = vadd.f32 %v166_v46, %v93_v51 }
 0x11e   :  { %v168_v54 = vpop.eup %167 }
 0x11f   :  { %v98_v57 = vsel %vm97_vm8, %v166_v46, %v94_v53  ;;  %v105_v58 = vmul.f32 %v168_v54, %v89_v47  ;;  %vm110_vm10 = vweird.f32 %v168_v54 }
 0x120   :  { %v103_v59 = vsel %vm100_vm9, %v102_v55, %v98_v57  ;;  %vm111_vm12 = vmor %vm109_vm11, %vm110_vm10 }
 0x121   :  { %v106_v60 = vsub.f32 1.0, %v105_v58  ;;  %v119_v61 = vmul.f32 %v118_v56, %v103_v59 }
 0x123   :  { %v107_v3 = vmul.f32 %v168_v54, %v106_v60  ;;  %v121_v4 = vadd.f32 1.0, %v119_v61  ;;  %v124_v5 = vmul.f32 %v119_v61, %v260_v12 }
 0x125   :  { %v108_v6 = vadd.f32 %v168_v54, %v107_v3  ;;  %v127_v7 = vsub.f32 %v126_v1, %v124_v5  ;;  %v129_v8 = vmul.f32 %v121_v4, %v252_v0 }
 0x127   :  { %v112_v10 = vsel %vm111_vm12, %v168_v54, %v108_v6  ;;  %v131_v11 = vadd.f32 %v129_v8, %v127_v7 }
 0x128   :  { %v117_v13 = vsel %vm114_vm13, %v116_v9, %v112_v10 }
 0x129   :  { %v120_v14 = vmul.f32 %v118_v56, %v117_v13  ;;  %133 = vst.msk [vmem:[#allocation7] sm:$0xff] %vm35_vm0, %v131_v11 }
 0x12b   :  { %v122_v15 = vadd.f32 1.0, %v120_v14  ;;  %v125_v16 = vmul.f32 %v120_v14, %v265_v17 }
 0x12d   :  { %v128_v12 = vsub.f32 %v126_v1, %v125_v16  ;;  %v130_v0 = vmul.f32 %v122_v15, %v256_v2 }
 0x12f   :  { %v132_v18 = vadd.f32 %v130_v0, %v128_v12 }
 0x131   :  { %134 = vst.msk [vmem:[#allocation7 + $0x8] sm:$0xff] %vm35_vm0, %v132_v18 }
 0x132   :  { %147 = dma.vmem_to_hbm [thread:$0]  %s140_s1, 256, %s142_s24, [#allocation6], %s222_s17, %s222_s17, %s223_s18  }
 0x133   :  { %219 = dma.done.wait [#allocation6], 256  }
 0x134   :  { %220 = vsyncadd [#allocation6], 4294967040 }
 0x135   :  { %152 = vsyncpa [#allocation5], 1 }
 0x136   :  { %153 = vsyncpa [#allocation6], 1 }

</bundles_post_ra>
